<compile_context>
chip_gen: v6e
topology: v6e:2x2x1
jax: 0.10.0
libtpu: 0.0.40
codegen_flags: <defaults>
</compile_context>

<pallas_src>
import jax
import jax.numpy as jnp
import numpy as np
from jax.experimental import pallas as pl
from jax.experimental.pallas import tpu as pltpu

_LANE = 128


def _make_relaxloss_kernel(C, tpc, n_chunks, ragged):
    """Grid = (batch, pixel-tiles).  Per sample, accumulates lane-wise:
       out_inner[b, s, l] += t0 * sum_c log(max(softmax_c, thresh))   (kept log-term)
       out_count[b, s, l] += t0                                        (kept-pixel count)."""

    def kernel(x_ref, lbl_ref, inner_ref, count_ref):
        p = pl.program_id(1)

        @pl.when(p == 0)
        def _init():
            inner_ref[...] = jnp.zeros_like(inner_ref)
            count_ref[...] = jnp.zeros_like(count_ref)

        # Channel 0 of the module's 2-wide one-hot == (label == 0) == (1 - ignore_mask).
        t0 = (lbl_ref[0, 0] == 0).astype(jnp.float32)                  # (tpc, 128)
        xs = [x_ref[0, c].astype(jnp.float32) for c in range(C)]        # C x (tpc, 128)

        if ragged:  # trace-time flag: only the ragged tiling emits the tail mask
            cidx = jax.lax.broadcasted_iota(jnp.int32, (tpc, _LANE), 0) + p * tpc
            valid = cidx < n_chunks
            t0 = jnp.where(valid, t0, 0.0)
            xs = [jnp.where(valid, xc, 0.0) for xc in xs]  # keep exp/log finite on OOB chunks

        # log-softmax over C as unrolled elementwise VPU ops: C exps + 1 log per pixel.
        m = xs[0]
        for c in range(1, C):
            m = jnp.maximum(m, xs[c])
        xm = [xc - m for xc in xs]
        e_sum = jnp.exp(xm[0])
        for c in range(1, C):
            e_sum = e_sum + jnp.exp(xm[c])
        lse = jnp.log(e_sum)

        # customsoftmax threshold: t0 * sum_c(soft * t0) == t0 (softmax sums to 1 over C), so
        # in log space the clamp on kept pixels is max(log_soft, 0).  Non-kept pixels are
        # multiplied by t0 == 0 below, and max(., 0) keeps them finite (no -inf * 0 NaN).
        csum = jnp.maximum(xm[0] - lse, 0.0)
        for c in range(1, C):
            csum = csum + jnp.maximum(xm[c] - lse, 0.0)

        inner_ref[0] = inner_ref[0] + t0 * csum   # lane-wise accumulate; no in-kernel XLU reduce
        count_ref[0] = count_ref[0] + t0          # per-sample kept-pixel count (s0)

    return kernel


def relax_loss_pallas(inputs, target_label, *, upper_bound=1.0, norm=False, tile_p=8192):
    """inputs: (B, C, H, W) float logits (any float dtype);
       target_label: (B, 1, H, W) integer labels in {0, 1}."""
    B, C, H, W = inputs.shape
    P = H * W
    n_chunks = -(-P // _LANE)                  # ceil(P / 128)
    P128 = n_chunks * _LANE

    x = inputs.reshape(B, C, P)                # metadata-only reshapes (contiguous)
    lbl = target_label.reshape(B, 1, P)
    if P128 != P:
        # Rare path: one lane-alignment pad pass (labels padded with 1 => never counted as kept).
        x = jnp.pad(x, ((0, 0), (0, 0), (0, P128 - P)))
        lbl = jnp.pad(lbl, ((0, 0), (0, 0), (0, P128 - P)), constant_values=1)
    x = x.reshape(B, C, n_chunks, _LANE)
    lbl = lbl.reshape(B, 1, n_chunks, _LANE)

    # Pixel-tile size in 128-wide chunks: full extent, or a multiple of 8 (sublane rule).
    tpc_req = max(1, tile_p // _LANE)
    if tpc_req >= n_chunks or n_chunks <= 8:
        tpc = n_chunks
    else:
        tpc = max(8, min((tpc_req // 8) * 8, (n_chunks // 8) * 8))
    n_p = -(-n_chunks // tpc)
    ragged = (n_chunks % tpc) != 0

    kernel = _make_relaxloss_kernel(C, tpc, n_chunks, ragged)
    # TODO(synk): for B == 1 on v7x, split the pixel axis into an outer "parallel" axis so both
    # TensorCores are fed; pipeline_mode=pl.Buffered(3) on the logits spec is a further
    # few-percent option once per-tile time is short.
    inner_lanes, count_lanes = pl.pallas_call(
        kernel,
        out_shape=(
            jax.ShapeDtypeStruct((B, tpc, _LANE), jnp.float32),
            jax.ShapeDtypeStruct((B, tpc, _LANE), jnp.float32),
        ),
        grid_spec=pltpu.PrefetchScalarGridSpec(
            num_scalar_prefetch=0,
            grid=(B, n_p),
            in_specs=[
                pl.BlockSpec((1, C, tpc, _LANE), lambda i, p: (i, 0, p, 0)),   # logits tile
                pl.BlockSpec((1, 1, tpc, _LANE), lambda i, p: (i, 0, p, 0)),   # raw label tile
            ],
            out_specs=(
                pl.BlockSpec((1, tpc, _LANE), lambda i, p: (i, 0, 0)),         # resident acc
                pl.BlockSpec((1, tpc, _LANE), lambda i, p: (i, 0, 0)),         # resident acc
            ),
        ),
        compiler_params=pltpu.CompilerParams(
            dimension_semantics=("parallel", "arbitrary"),
        ),
    )(x, lbl)

    # ---- per-sample label-only scalars + final reduction on the tiny kernel outputs ----
    inner = jnp.sum(inner_lanes, axis=(1, 2))              # (B,)  sum_p t0 * sum_c customsoftmax
    s0 = jnp.sum(count_lanes, axis=(1, 2))                 # (B,)  #pixels with label == 0
    hist0 = s0 / jnp.float32(P)                            # full one-hot sums to H*W
    if norm:
        # NOTE: the reference numpy produces NaN when a sample has no label-0 pixels; guarded here.
        cw = jnp.where(hist0 != 0.0, upper_bound / hist0, 0.0) + 1.0
    else:
        cw = (hist0 != 0.0).astype(jnp.float32) * upper_bound * (1.0 - hist0) + 1.0
    # border_weights == 1 everywhere and is broadcast over the full batch in the reference loop
    # (factor B); denominator = 1*H*W - ignore_i + 1 = s0_i + 1.
    per_sample = (-jnp.float32(B)) * cw * inner / (s0 + 1.0)
    return jnp.sum(per_sample)


def relax_loss_ref(inputs, target_label, *, upper_bound=1.0, norm=False):
    """Literal pure-JAX port of the PyTorch forward, for verification."""
    B, C, H, W = inputs.shape
    inputs = inputs.astype(jnp.float32)
    lbl = target_label.reshape(B, H, W).astype(jnp.int32)
    target = jax.nn.one_hot(lbl, 2, axis=1, dtype=jnp.float32)    # (B, 2, H, W)
    weights = target[:, :-1].sum(1)                               # (B, H, W)
    ignore_mask = weights == 0
    weights = jnp.where(ignore_mask, 1.0, weights)

    loss = jnp.float32(0.0)
    for i in range(B):
        t = target[i]                                             # (2, H, W)
        hist = t.sum(axis=(1, 2)) / t.sum()
        if norm:
            hist = (hist != 0) * upper_bound * (1.0 / hist) + 1.0
        else:
            hist = (hist != 0) * upper_bound * (1.0 - hist) + 1.0
        cw = hist[:-1]                                            # (1,)

        inp = inputs[i][None]                                     # (1, C, H, W)
        tgt = target[i][None]                                     # (1, 2, H, W)
        soft = jax.nn.softmax(inp, axis=1)
        mh = tgt[:, :-1]                                          # (1, 1, H, W)
        cs = jnp.log(jnp.maximum(soft, mh * (soft * mh).sum(1, keepdims=True)))
        inner = (mh * cw[None, :, None, None] * cs).sum(1)        # (1, H, W)

        mask_i = ignore_mask[i].astype(jnp.float32)               # (H, W)
        loss_matrix = -1.0 / weights * inner * (1.0 - mask_i)     # (B, H, W) via broadcast
        l = loss_matrix.sum() / (1 * H * W - ignore_mask[i].sum() + 1)
        loss = loss + l
    return loss


if __name__ == "__main__":
    key = jax.random.PRNGKey(0)
    k1, k2, k3, k4 = jax.random.split(key, 4)

    # Primary check: module-sized small shapes (single tile per sample).
    B, C, H, W = 2, 4, 16, 16
    inputs = jax.random.normal(k1, (B, C, H, W), dtype=jnp.float32)
    target_label = jax.random.randint(k2, (B, 1, H, W), 0, 2, dtype=jnp.int32)
    out = jax.block_until_ready(relax_loss_pallas(inputs, target_label))
    ref = jax.block_until_ready(relax_loss_ref(inputs, target_label))
    assert np.isfinite(float(out))
    assert np.allclose(float(out), float(ref), rtol=1e-3, atol=1e-4), (float(out), float(ref))

    # Second check exercises the multi-tile + ragged-tail path (18 chunks, 8-chunk tiles).
    B2, C2, H2, W2 = 2, 4, 48, 48
    inputs2 = jax.random.normal(k3, (B2, C2, H2, W2), dtype=jnp.float32)
    target_label2 = jax.random.randint(k4, (B2, 1, H2, W2), 0, 2, dtype=jnp.int32)
    out2 = jax.block_until_ready(relax_loss_pallas(inputs2, target_label2, tile_p=1024))
    ref2 = jax.block_until_ready(relax_loss_ref(inputs2, target_label2))
    assert np.isfinite(float(out2))
    assert np.allclose(float(out2), float(ref2), rtol=1e-3, atol=1e-4), (float(out2), float(ref2))

    print("KERNEL_OK")
</pallas_src>

<mosaic_0001>
module attributes {stable_mosaic.version = 11 : i64} {
  func.func @kernel(%arg0: i32, %arg1: i32, %arg2: memref<1x4x2x128xf32, #tpu.memory_space<vmem>>, %arg3: memref<1x1x2x128xi32, #tpu.memory_space<vmem>>, %arg4: memref<1x2x128xf32, #tpu.memory_space<vmem>>, %arg5: memref<1x2x128xf32, #tpu.memory_space<vmem>>) attributes {dimension_semantics = [#tpu.dimension_semantics<parallel>, #tpu.dimension_semantics<arbitrary>], iteration_bounds = array<i64: 2, 1>, scalar_prefetch = 0 : i64, scratch_operands = 0 : i64, tpu.core_type = #tpu.core_type<tc>, window_params = [{transform_indices = @transform_0, window_bounds = array<i64: 1, 4, 2, 128>}, {transform_indices = @transform_1, window_bounds = array<i64: 1, 1, 2, 128>}, {transform_indices = @transform_2, window_bounds = array<i64: 1, 2, 128>}, {transform_indices = @transform_3, window_bounds = array<i64: 1, 2, 128>}]} {
    %c0_i32 = arith.constant 0 : i32
    %0 = arith.cmpi eq, %arg1, %c0_i32 : i32
    %1 = arith.extui %0 : i1 to i32
    %c0_i32_0 = arith.constant 0 : i32
    %2 = arith.cmpi ne, %1, %c0_i32_0 : i32
    scf.if %2 {
      %cst_33 = arith.constant 0.000000e+00 : f32
      %60 = vector.broadcast %cst_33 : f32 to vector<1x2x128xf32>
      %c0_34 = arith.constant 0 : index
      %c0_35 = arith.constant 0 : index
      %c0_36 = arith.constant 0 : index
      %61 = vector.load %arg4[%c0_34, %c0_35, %c0_36] : memref<1x2x128xf32, #tpu.memory_space<vmem>>, vector<1x2x128xf32>
      tpu.vector_store %arg4[%c0_34, %c0_35, %c0_36], %60 {strides = array<i32>} : memref<1x2x128xf32, #tpu.memory_space<vmem>>, vector<1x2x128xf32>,
      %cst_37 = arith.constant 0.000000e+00 : f32
      %62 = vector.broadcast %cst_37 : f32 to vector<1x2x128xf32>
      %c0_38 = arith.constant 0 : index
      %c0_39 = arith.constant 0 : index
      %c0_40 = arith.constant 0 : index
      %63 = vector.load %arg5[%c0_38, %c0_39, %c0_40] : memref<1x2x128xf32, #tpu.memory_space<vmem>>, vector<1x2x128xf32>
      tpu.vector_store %arg5[%c0_38, %c0_39, %c0_40], %62 {strides = array<i32>} : memref<1x2x128xf32, #tpu.memory_space<vmem>>, vector<1x2x128xf32>,
    } else {
    }
    %c0 = arith.constant 0 : index
    %c0_1 = arith.constant 0 : index
    %c0_2 = arith.constant 0 : index
    %c0_3 = arith.constant 0 : index
    %3 = vector.load %arg3[%c0, %c0_1, %c0_2, %c0_3] : memref<1x1x2x128xi32, #tpu.memory_space<vmem>>, vector<1x1x2x128xi32>
    %4 = vector.shape_cast %3 : vector<1x1x2x128xi32> to vector<2x128xi32>
    %c0_i32_4 = arith.constant 0 : i32
    %5 = vector.broadcast %c0_i32_4 : i32 to vector<2x128xi32>
    %6 = arith.cmpi eq, %4, %5 : vector<2x128xi32>
    %7 = arith.extui %6 : vector<2x128xi1> to vector<2x128xi32>
    %8 = arith.sitofp %7 : vector<2x128xi32> to vector<2x128xf32>
    %c0_5 = arith.constant 0 : index
    %c0_6 = arith.constant 0 : index
    %c0_7 = arith.constant 0 : index
    %c0_8 = arith.constant 0 : index
    %9 = vector.load %arg2[%c0_5, %c0_6, %c0_7, %c0_8] : memref<1x4x2x128xf32, #tpu.memory_space<vmem>>, vector<1x1x2x128xf32>
    %10 = vector.shape_cast %9 : vector<1x1x2x128xf32> to vector<2x128xf32>
    %c0_9 = arith.constant 0 : index
    %c1 = arith.constant 1 : index
    %c0_10 = arith.constant 0 : index
    %c0_11 = arith.constant 0 : index
    %11 = vector.load %arg2[%c0_9, %c1, %c0_10, %c0_11] : memref<1x4x2x128xf32, #tpu.memory_space<vmem>>, vector<1x1x2x128xf32>
    %12 = vector.shape_cast %11 : vector<1x1x2x128xf32> to vector<2x128xf32>
    %c0_12 = arith.constant 0 : index
    %c2 = arith.constant 2 : index
    %c0_13 = arith.constant 0 : index
    %c0_14 = arith.constant 0 : index
    %13 = vector.load %arg2[%c0_12, %c2, %c0_13, %c0_14] : memref<1x4x2x128xf32, #tpu.memory_space<vmem>>, vector<1x1x2x128xf32>
    %14 = vector.shape_cast %13 : vector<1x1x2x128xf32> to vector<2x128xf32>
    %c0_15 = arith.constant 0 : index
    %c3 = arith.constant 3 : index
    %c0_16 = arith.constant 0 : index
    %c0_17 = arith.constant 0 : index
    %15 = vector.load %arg2[%c0_15, %c3, %c0_16, %c0_17] : memref<1x4x2x128xf32, #tpu.memory_space<vmem>>, vector<1x1x2x128xf32>
    %16 = vector.shape_cast %15 : vector<1x1x2x128xf32> to vector<2x128xf32>
    %17 = arith.maximumf %10, %12 : vector<2x128xf32>
    %18 = arith.maximumf %17, %14 : vector<2x128xf32>
    %19 = arith.maximumf %18, %16 : vector<2x128xf32>
    %20 = arith.subf %10, %19 : vector<2x128xf32>
    %21 = arith.subf %12, %19 : vector<2x128xf32>
    %22 = arith.subf %14, %19 : vector<2x128xf32>
    %23 = arith.subf %16, %19 : vector<2x128xf32>
    %24 = math.exp %20 : vector<2x128xf32>
    %25 = math.exp %21 : vector<2x128xf32>
    %26 = arith.addf %24, %25 : vector<2x128xf32>
    %27 = math.exp %22 : vector<2x128xf32>
    %28 = arith.addf %26, %27 : vector<2x128xf32>
    %29 = math.exp %23 : vector<2x128xf32>
    %30 = arith.addf %28, %29 : vector<2x128xf32>
    %31 = math.log %30 : vector<2x128xf32>
    %32 = arith.subf %20, %31 : vector<2x128xf32>
    %cst = arith.constant 0.000000e+00 : f32
    %33 = vector.broadcast %cst : f32 to vector<2x128xf32>
    %34 = arith.maximumf %32, %33 : vector<2x128xf32>
    %35 = arith.subf %21, %31 : vector<2x128xf32>
    %cst_18 = arith.constant 0.000000e+00 : f32
    %36 = vector.broadcast %cst_18 : f32 to vector<2x128xf32>
    %37 = arith.maximumf %35, %36 : vector<2x128xf32>
    %38 = arith.addf %34, %37 : vector<2x128xf32>
    %39 = arith.subf %22, %31 : vector<2x128xf32>
    %cst_19 = arith.constant 0.000000e+00 : f32
    %40 = vector.broadcast %cst_19 : f32 to vector<2x128xf32>
    %41 = arith.maximumf %39, %40 : vector<2x128xf32>
    %42 = arith.addf %38, %41 : vector<2x128xf32>
    %43 = arith.subf %23, %31 : vector<2x128xf32>
    %cst_20 = arith.constant 0.000000e+00 : f32
    %44 = vector.broadcast %cst_20 : f32 to vector<2x128xf32>
    %45 = arith.maximumf %43, %44 : vector<2x128xf32>
    %46 = arith.addf %42, %45 : vector<2x128xf32>
    %c0_21 = arith.constant 0 : index
    %c0_22 = arith.constant 0 : index
    %c0_23 = arith.constant 0 : index
    %47 = vector.load %arg4[%c0_21, %c0_22, %c0_23] : memref<1x2x128xf32, #tpu.memory_space<vmem>>, vector<1x2x128xf32>
    %48 = vector.shape_cast %47 : vector<1x2x128xf32> to vector<2x128xf32>
    %49 = arith.mulf %8, %46 : vector<2x128xf32>
    %50 = arith.addf %48, %49 : vector<2x128xf32>
    %c0_24 = arith.constant 0 : index
    %c0_25 = arith.constant 0 : index
    %c0_26 = arith.constant 0 : index
    %51 = vector.load %arg4[%c0_24, %c0_25, %c0_26] : memref<1x2x128xf32, #tpu.memory_space<vmem>>, vector<1x2x128xf32>
    %52 = vector.shape_cast %51 : vector<1x2x128xf32> to vector<2x128xf32>
    %53 = vector.shape_cast %50 : vector<2x128xf32> to vector<1x2x128xf32>
    tpu.vector_store %arg4[%c0_24, %c0_25, %c0_26], %53 {strides = array<i32>} : memref<1x2x128xf32, #tpu.memory_space<vmem>>, vector<1x2x128xf32>,
    %c0_27 = arith.constant 0 : index
    %c0_28 = arith.constant 0 : index
    %c0_29 = arith.constant 0 : index
    %54 = vector.load %arg5[%c0_27, %c0_28, %c0_29] : memref<1x2x128xf32, #tpu.memory_space<vmem>>, vector<1x2x128xf32>
    %55 = vector.shape_cast %54 : vector<1x2x128xf32> to vector<2x128xf32>
    %56 = arith.addf %55, %8 : vector<2x128xf32>
    %c0_30 = arith.constant 0 : index
    %c0_31 = arith.constant 0 : index
    %c0_32 = arith.constant 0 : index
    %57 = vector.load %arg5[%c0_30, %c0_31, %c0_32] : memref<1x2x128xf32, #tpu.memory_space<vmem>>, vector<1x2x128xf32>
    %58 = vector.shape_cast %57 : vector<1x2x128xf32> to vector<2x128xf32>
    %59 = vector.shape_cast %56 : vector<2x128xf32> to vector<1x2x128xf32>
    tpu.vector_store %arg5[%c0_30, %c0_31, %c0_32], %59 {strides = array<i32>} : memref<1x2x128xf32, #tpu.memory_space<vmem>>, vector<1x2x128xf32>,
    return
  }
  func.func @transform_0(%arg0: i32, %arg1: i32) -> (i32, i32, i32, i32) {
    %c0_i32 = arith.constant 0 : i32
    %c0_i32_0 = arith.constant 0 : i32
    %c0_i32_1 = arith.constant 0 : i32
    return %arg0, %c0_i32, %arg1, %c0_i32_0 : i32, i32, i32, i32
  }
  func.func @transform_1(%arg0: i32, %arg1: i32) -> (i32, i32, i32, i32) {
    %c0_i32 = arith.constant 0 : i32
    %c0_i32_0 = arith.constant 0 : i32
    %c0_i32_1 = arith.constant 0 : i32
    return %arg0, %c0_i32, %arg1, %c0_i32_0 : i32, i32, i32, i32
  }
  func.func @transform_2(%arg0: i32, %arg1: i32) -> (i32, i32, i32) {
    %c0_i32 = arith.constant 0 : i32
    %c0_i32_0 = arith.constant 0 : i32
    %c0_i32_1 = arith.constant 0 : i32
    return %arg0, %c0_i32, %c0_i32_0 : i32, i32, i32
  }
  func.func @transform_3(%arg0: i32, %arg1: i32) -> (i32, i32, i32) {
    %c0_i32 = arith.constant 0 : i32
    %c0_i32_0 = arith.constant 0 : i32
    %c0_i32_1 = arith.constant 0 : i32
    return %arg0, %c0_i32, %c0_i32_0 : i32, i32, i32
  }
}

</mosaic_0001>

<bundles_post_ra>
// kernel: tpu_custom_call.1
= control target key start
LH: loop header
LB: loop body
LE: loop exit
PB: predicated region body
PF: predicated region fallthrough
CT: control target
= control target key end

     0   :  { %s985_s0 = inlined_call_operand.hbm [shape: f32[2,4,2,128], index: 0, kind: input, shape index: {}]   ;;  %s986_s1 = inlined_call_operand.hbm [shape: s32[2,1,2,128], index: 1, kind: input, shape index: {}]   ;;  %s987_s2 = inlined_call_operand.hbm [shape: f32[2,2,128], index: 2, kind: output, shape index: {0}]   ;;  %s988_s3 = inlined_call_operand.hbm [shape: f32[2,2,128], index: 3, kind: output, shape index: {1}]  }
   0x1   :  { %989 = sst [smem:[#allocation14_spill]] %s985_s0 }
   0x2   :  { %9 = vsyncpa [#allocation3], 0 }
   0x3   :  { %11 = vsyncpa [#allocation3 + $0x1], 0 }
   0x4   :  { %12 = vsyncpa [#allocation6], 0 }
   0x5   :  { %14 = vsyncpa [#allocation6 + $0x1], 0 }
   0x6   :  { %15 = vsyncpa [#allocation4], 0 }
   0x7   :  { %17 = vsyncpa [#allocation4 + $0x1], 0 }
   0x8   :  { %18 = vsyncpa [#allocation9], 0 }
   0x9   :  { %20 = vsyncpa [#allocation9 + $0x1], 0  ;;  %s787_s12 = smov 0   ;;  %s789_s13 = smov 0  }
   0xa   :  { %s791_s14 = smov 0   ;;  %s793_s15 = smov 0  }
   0xb   :  { %s795_s16 = smov 0   ;;  %s797_s17 = smov 0  }
   0xc LB: > { %s478_s18 = sadd.s32 4294967295, %s758_s17   ;;  %s479_s19 = sadd.s32 4294967294, %s758_s17   ;;  %s758_s17 = sphi %s797_s17, %s26_s17   ;;  %s754_s16 = sphi %s795_s16, %s1002_s16   ;;  %s750_s15 = sphi %s793_s15, %s1001_s15   ;;  %s746_s14 = sphi %s791_s14, %s1000_s14   ;;  %s742_s13 = sphi %s789_s13, %s999_s13   ;;  %s738_s12 = sphi %s787_s12, %s998_s12  }
   0xd   : > { %s38_s20 = sadd.s32 1, %s754_s16  ;;  %s47_s21 = sadd.s32 1, %s746_s14 }
   0xe   : > { %p40_p0 = scmp.ge.s32.totalorder %s38_s20, 2  ;;  %p54_p1 = scmp.ne.s32.totalorder %s746_s14, %s742_s13 }
   0xf   : > { %p55_p2 = scmp.eq.s32.totalorder %s758_s17, 0  ;;  %p60_p3 = scmp.ne.s32.totalorder %s742_s13, %s738_s12 }
  0x10   : > { %s1004_s20 = smov (%p40_p0, %s38_s20), 0  ;;  %p61_p5 = scmp.eq.s32.totalorder %s478_s18, 0 }
  0x11   : > { %p828_p4 = por %p55_p2, %p54_p1  ;;  %s42_s23 = ssub.s32 %s754_s16, %s1004_s20 }
  0x12   : > { %p112_p6 = scmp.eq.s32.totalorder %s478_s18, 1  ;;  %p45_p7 = scmp.eq.s32.totalorder %s42_s23, 0 }
  0x13   : > { %p834_p8 = por %p61_p5, %p60_p3  ;;  %p118_p10 = scmp.eq.s32.totalorder %s479_s19, 1 }
  0x14   : > { %p838_p9 = por %p112_p6, %p54_p1  ;;  %p525_p13 = scmp.lt.s32.totalorder %s758_s17, 2 }
  0x15   : > { %s843_s26 = scalar_select %p45_p7, %s746_s14, %s47_s21  }
  0x16   : > { %p845_p11 = por %p118_p10, %p60_p3  ;;  %s852_s28 = sand.u32 1, %s746_s14  }
  0x17   : > { %s482_s29 = sshll.u32 %s852_s28, 3  ;;  %s502_s30 = sshll.u32 %s754_s16, 7 }
  0x18   : > { %s994_s0 = sld [smem:[#allocation14_spill]]  ;;  %s168_s7 = scalar_lea.vmem [#allocation2], %s482_s29 }
  0x19   : > { %s176_s8 = sshll.u32 %s168_s7, 4  ;;  %p861_p0 = pnand %p525_p13, %p828_p4  ;;  %s177_s8 = int_to_ptr.vmem [resolvable:$true] %s176_s8 }
  0x1a   : > { %p487_p1 = scmp.ge.s32.totalorder %s758_s17, 1  ;;  %s165_s10 = scalar_lea.sflag [#allocation3], %s852_s28 }
  0x1b   : > { %p590_p2 = pneg %p861_p0  ;;  %s601_s11 = scalar_lea.vmem %s177_s8, 128 }
  0x1c   : > { %p602_p3 = scmp.ne.s32.totalorder %s177_s8, %s601_s11  ;;  %s760_s18 = smov [#allocation2]  }
  0x1d   : > { %s606_s19 = sshll.u32 %s760_s18, 4  ;;  %s607_s19 = int_to_ptr.vmem [resolvable:$false] %s606_s19 }
  0x1e   : > { %s175_s6 = scalar_lea.hbm %s994_s0, %s502_s30  ;;  %p604_p5 = pnand %p602_p3, %p590_p2 }
  0x1f   : > { %s608_s21 = scalar_lea.vmem %s607_s19, 256  ;;  %p609_p4 = scmp.lt.s32.totalorder %s177_s8, %s607_s19 }
  0x20   : > { %p605_p6 = pneg %p604_p5  ;;  %p610_p7 = scmp.lt.s32.totalorder %s608_s21, %s601_s11 }
  0x22   : > { %p611_p10 = por %p610_p7, %p609_p4 }
  0x24   : > { %p612_p13 = pnand %p611_p10, %p605_p6 }
  0x26   : > { %615 = shalt.err (!%p612_p13)
}
  0x27   : > { %s761_s22 = smov 32   ;;  %s762_s23 = smov 2  }
  0x28   : > { %514 = dma.hbm_to_vmem [thread:$0]  (!%p861_p0), %s175_s6, 128, %s177_s8, %s165_s10, %s761_s22, %s761_s22, %s762_s23  }
  0x29   : > { %p203_p3 = scmp.lt.s32.totalorder %s758_s17, 3  ;;  %s485_s29 = sshll.u32 %s852_s28, 1 }
  0x2a   : > { %s486_s30 = sshll.u32 %s754_s16, 5  ;;  %s190_s18 = scalar_lea.vmem [#allocation5], %s485_s29 }
  0x2b   : > { %p879_p5 = pnand %p487_p1, %p203_p3  ;;  %s196_s11 = scalar_lea.hbm %s986_s1, %s486_s30 }
  0x2c   : > { %s198_s19 = sshll.u32 %s190_s18, 4  ;;  %s187_s21 = scalar_lea.sflag [#allocation6], %s852_s28  ;;  %s199_s19 = int_to_ptr.vmem [resolvable:$true] %s198_s19 }
  0x2d   : > { %s629_s0 = scalar_lea.vmem %s199_s19, 32  ;;  %s763_s6 = smov [#allocation5]  }
  0x2e   : > { %p630_p6 = scmp.ne.s32.totalorder %s199_s19, %s629_s0  ;;  %s634_s8 = sshll.u32 %s763_s6, 4  ;;  %s635_s8 = int_to_ptr.vmem [resolvable:$false] %s634_s8 }
  0x2f   : > { %s636_s10 = scalar_lea.vmem %s635_s8, 64  ;;  %p637_p1 = scmp.lt.s32.totalorder %s199_s19, %s635_s8 }
  0x30   : > { %p632_p4 = pnand %p630_p6, %p590_p2  ;;  %p638_p10 = scmp.lt.s32.totalorder %s636_s10, %s629_s0 }
  0x32   : > { %p633_p7 = pneg %p632_p4  ;;  %p639_p13 = por %p638_p10, %p637_p1 }
  0x34   : > { %p640_p3 = pnand %p639_p13, %p633_p7 }
  0x36   : > { %643 = shalt.err (!%p640_p3)
}
  0x37   : > { %517 = dma.hbm_to_vmem [thread:$0]  (!%p861_p0), %s196_s11, 32, %s199_s19, %s187_s21  }
  0x38   : > { %207 = sbr.rel (%p879_p5) target bundleno = 156 (0x9c), region = 28  ;;  %s895_s28 = sand.u32 (!%p879_p5), 1, %s742_s13  }
  0x39   : > { %s488_s22 = sshll.u32 (!%p879_p5), %s895_s28, 3  ;;  %s210_s23 = scalar_lea.sflag (!%p879_p5), [#allocation3], %s895_s28 }
  0x3a   : > { %s213_s29 = scalar_lea.vmem (!%p879_p5), [#allocation2], %s488_s22 }
  0x3d   : > { %721 = dma.done.wait (%p834_p8), %s210_s23, 128  }
  0x3e   : > { %723 = vsyncadd (%p834_p8), %s210_s23, 4294967168  ;;  %s489_s0 = sshll.u32 %s895_s28, 1  ;;  %s219_s9 = scalar_lea.sflag [#allocation6], %s895_s28 }
  0x3f   : > { %s222_s30 = scalar_lea.vmem [#allocation5], %s489_s0 }
  0x40   : > { %725 = dma.done.wait (%p834_p8), %s219_s9, 32  }
  0x41   : > { %727 = vsyncadd (%p834_p8), %s219_s9, 4294967264  ;;  %s909_s4 = scalar_lea.vmem [#allocation7], %s489_s0  ;;  %v764_v0 = vmov 0.0   ;;  %s254_s5 = scalar_lea.vmem [#allocation8], %s489_s0  ;;  %v261_v1 = vld [vmem:[%s222_s30] sm:$0x3] }
  0x42   : > { %259 = vst [vmem:[%s909_s4] sm:$0x3] %v764_v0  ;;  %260 = vst [vmem:[%s254_s5] sm:$0x3] %v764_v0  ;;  %s498_s7 = sshll.u32 %s750_s15, 5  ;;  %s342_s11 = sshll.u32 %s254_s5, 4  ;;  %v265_v2 = vld [vmem:[%s213_s29] sm:$0x3]  ;;  %s343_s11 = int_to_ptr.vmem [resolvable:$true] %s342_s11 }
  0x43   : > { %v493_v3 = vld [vmem:[%s213_s29 + $0x2] sm:$0x3]  ;;  %vm262_vm0 = vcmp.eq.s32.totalorder %v261_v1, 0  ;;  %v494_v4 = vld [vmem:[%s213_s29 + $0x4] sm:$0x3]  ;;  %s921_s19 = scalar_lea.hbm %s988_s3, %s498_s7  ;;  %s316_s21 = scalar_lea.sflag [#allocation9], %s895_s28 }
  0x44   : > { %v272_v5 = vmax.f32 %v265_v2, %v493_v3  ;;  %v913_v6 = vsel %vm262_vm0, 1.0, %v764_v0  ;;  %v495_v7 = vld [vmem:[%s213_s29 + $0x6] sm:$0x3]  ;;  %s644_s6 = scalar_lea.vmem %s343_s11, 32  ;;  %s765_s8 = smov [#allocation8]  }
  0x45   : > { %p645_p8 = scmp.ne.s32.totalorder %s343_s11, %s644_s6  ;;  %s648_s10 = sshll.u32 %s765_s8, 4  ;;  %s649_s10 = int_to_ptr.vmem [resolvable:$false] %s648_s10 }
  0x46   : > { %v273_v9 = vmax.f32 %v272_v5, %v494_v4  ;;  %s650_s22 = scalar_lea.vmem %s649_s10, 64  ;;  %p651_p5 = scmp.lt.s32.totalorder %s343_s11, %s649_s10 }
  0x47   : > { %p646_p0 = pnand %p645_p8, %p838_p9  ;;  %p652_p6 = scmp.lt.s32.totalorder %s650_s22, %s644_s6 }
  0x48   : > { %v274_v11 = vmax.f32 %v273_v9, %v495_v7 }
  0x49   : > { %v307_v8 = vld [vmem:[%s254_s5] sm:$0x3]  ;;  %p647_p2 = pneg %p646_p0  ;;  %p653_p4 = por %p652_p6, %p651_p5 }
  0x4a   : > { %v308_v10 = vadd.f32 %v913_v6, %v307_v8 }
  0x4b   : > { %p654_p7 = pnand %p653_p4, %p647_p2 }
  0x4c   : > { %309 = vst [vmem:[%s254_s5] sm:$0x3] %v308_v10 }
  0x4d   : > { %657 = shalt.err (!%p654_p7)
}
  0x4e   : > { %s658_s23 = scalar_lea.hbm %s921_s19, 32  ;;  %s662_s9 = scalar_lea.hbm %s988_s3, 64 }
  0x4f   : > { %p659_p1 = scmp.ne.s32.totalorder %s921_s19, %s658_s23  ;;  %p663_p3 = scmp.lt.s32.totalorder %s921_s19, %s988_s3 }
  0x50   : > { %p664_p8 = scmp.lt.s32.totalorder %s662_s9, %s658_s23 }
  0x51   : > { %p660_p10 = pnand %p659_p1, %p838_p9 }
  0x52   : > { %p665_p0 = por %p664_p8, %p663_p3 }
  0x53   : > { %p661_p13 = pneg %p660_p10 }
  0x55   : > { %p666_p2 = pnand %p665_p0, %p661_p13 }
  0x57   : > { %669 = shalt.err (!%p666_p2)
}
  0x58   : > { %508 = dma.vmem_to_hbm [thread:$0]  (%p838_p9), %s343_s11, 32, %s921_s19, %s316_s21   ;;  %v275_v12 = vsub.f32 %v265_v2, %v274_v11  ;;  %v276_v13 = vsub.f32 %v493_v3, %v274_v11  ;;  %v277_v14 = vsub.f32 %v494_v4, %v274_v11  ;;  %v278_v15 = vsub.f32 %v495_v7, %v274_v11  ;;  %v303_v40 = vld [vmem:[%s909_s4] sm:$0x3] }
  0x59   : > { %s329_s11 = sshll.u32 %s909_s4, 4  ;;  %s327_s19 = scalar_lea.hbm %s987_s2, %s498_s7  ;;  %s330_s11 = int_to_ptr.vmem [resolvable:$true] %s329_s11 }
  0x5a   : > { %v279_v16 = vmul.f32 1.442695, %v275_v12  ;;  %v281_v17 = vmul.f32 1.442695, %v276_v13  ;;  %v284_v18 = vmul.f32 1.442695, %v277_v14 }
  0x5b   : > { %v287_v19 = vmul.f32 1.442695, %v278_v15  ;;  %s311_s21 = scalar_lea.sflag [#allocation4], %s895_s28  ;;  %s670_s6 = scalar_lea.vmem %s330_s11, 32 }
  0x5c   : > { %578 = vpow2.f32 %v279_v16  ;;  %p671_p5 = scmp.ne.s32.totalorder %s330_s11, %s670_s6  ;;  %s766_s8 = smov [#allocation7]  }
  0x5d   : > { %580 = vpow2.f32 %v281_v17  ;;  %s674_s10 = sshll.u32 %s766_s8, 4  ;;  %s675_s10 = int_to_ptr.vmem [resolvable:$false] %s674_s10 }
  0x5e   : > { %582 = vpow2.f32 %v284_v18  ;;  %p672_p6 = pnand %p671_p5, %p838_p9  ;;  %s676_s22 = scalar_lea.vmem %s675_s10, 64 }
  0x5f   : > { %584 = vpow2.f32 %v287_v19  ;;  %p677_p7 = scmp.lt.s32.totalorder %s330_s11, %s675_s10  ;;  %p678_p1 = scmp.lt.s32.totalorder %s676_s22, %s670_s6 }
  0x60   : > { %p673_p4 = pneg %p672_p6 }
  0x61   : > { %p679_p10 = por %p678_p1, %p677_p7 }
  0x63   : > { %p680_p13 = pnand %p679_p10, %p673_p4 }
  0x69   : > { %v579_v20 = vpop.eup %578 }
  0x6a   : > { %v581_v21 = vpop.eup %580 }
  0x6b   : > { %v583_v22 = vpop.eup %582  ;;  %v283_v23 = vadd.f32 %v581_v21, %v579_v20 }
  0x6c   : > { %v585_v24 = vpop.eup %584 }
  0x6d   : > { %v286_v25 = vadd.f32 %v583_v22, %v283_v23 }
  0x6f   : > { %v289_v26 = vadd.f32 %v585_v24, %v286_v25 }
  0x71   : > { %586 = vlog2.f32 %v289_v26 }
  0x7e   : > { %v587_v27 = vpop.eup %586 }
  0x7f   : > { %v291_v28 = vmul.f32 0.6931472, %v587_v27 }
  0x81   : > { %v292_v29 = vsub.f32 %v275_v12, %v291_v28  ;;  %v294_v30 = vsub.f32 %v276_v13, %v291_v28  ;;  %v297_v31 = vsub.f32 %v277_v14, %v291_v28  ;;  %v300_v32 = vsub.f32 %v278_v15, %v291_v28 }
  0x83   : > { %v293_v33 = vmax.f32 %v292_v29, 0.0  ;;  %v295_v34 = vmax.f32 %v294_v30, 0.0  ;;  %v298_v35 = vmax.f32 %v297_v31, 0.0  ;;  %v301_v37 = vmax.f32 %v300_v32, 0.0 }
  0x85   : > { %v296_v36 = vadd.f32 %v295_v34, %v293_v33 }
  0x87   : > { %v299_v38 = vadd.f32 %v298_v35, %v296_v36 }
  0x89   : > { %v302_v39 = vadd.f32 %v301_v37, %v299_v38 }
  0x8b   : > { %v304_v41 = vmul.f32 %v913_v6, %v302_v39 }
  0x8d   : > { %v305_v42 = vadd.f32 %v304_v41, %v303_v40 }
  0x8f   : > { %306 = vst [vmem:[%s909_s4] sm:$0x3] %v305_v42 }
  0x90   : > { %683 = shalt.err (!%p680_p13)
}
  0x91   : > { %s684_s15 = scalar_lea.hbm %s327_s19, 32  ;;  %s688_s7 = scalar_lea.hbm %s987_s2, 64 }
  0x92   : > { %p685_p3 = scmp.ne.s32.totalorder %s327_s19, %s684_s15  ;;  %p689_p2 = scmp.lt.s32.totalorder %s327_s19, %s987_s2 }
  0x93   : > { %p690_p5 = scmp.lt.s32.totalorder %s688_s7, %s684_s15 }
  0x94   : > { %p686_p8 = pnand %p685_p3, %p838_p9 }
  0x95   : > { %p691_p6 = por %p690_p5, %p689_p2 }
  0x96   : > { %p687_p0 = pneg %p686_p8 }
  0x98   : > { %p692_p12 = pnand %p691_p6, %p687_p0 }
  0x9a   : > { %695 = shalt.err (!%p692_p12)
}
  0x9b   : > { %507 = dma.vmem_to_hbm [thread:$0]  (%p838_p9), %s330_s11, 32, %s327_s19, %s311_s21  }
  0x9c PF: > { %s354_s0 = sand.u32 1, %s738_s12   ;;  %p997_p4 = scmp.ge.s32.totalorder %s758_s17, 2 }
  0x9d   : > { %s355_s9 = scalar_lea.sflag [#allocation4], %s354_s0 }
  0x9e   : > { %p519_p7 = pnand %p997_p4, %p845_p11 }
  0xa0   : > { %p520_p1 = pneg %p519_p7 }
  0xa2   : > { %729 = dma.done.wait (%p520_p1), %s355_s9, 32  }
  0xa3   : > { %731 = vsyncadd (%p520_p1), %s355_s9, 4294967264  ;;  %s364_s30 = scalar_lea.sflag [#allocation9], %s354_s0 }
  0xa4   : > { %733 = dma.done.wait (%p520_p1), %s364_s30, 32  }
  0xa5   : > { %735 = vsyncadd (%p520_p1), %s364_s30, 4294967264  ;;  %s26_s17 = sadd.s32 1, %s758_s17   ;;  %s998_s12 = smov %s742_s13 }
  0xa6   : > { %p23_p12 = scmp.ge.s32.totalorder %s26_s17, 4   ;;  %s999_s13 = smov %s746_s14 }
  0xa7   : > { %s1000_s14 = smov %s843_s26  ;;  %s1001_s15 = smov %s754_s16 }
  0xa8   : > { %s1002_s16 = smov %s1004_s20  ;;  %25 = sbr.rel (!%p23_p12) target bundleno = 12 (0xc), region = 110 }
  0xad   :  { %369 = vsyncpa [#allocation3], 1 }
  0xae   :  { %371 = vsyncpa [#allocation3 + $0x1], 1 }
  0xaf   :  { %372 = vsyncpa [#allocation6], 1 }
  0xb0   :  { %374 = vsyncpa [#allocation6 + $0x1], 1 }
  0xb1   :  { %375 = vsyncpa [#allocation4], 1 }
  0xb2   :  { %377 = vsyncpa [#allocation4 + $0x1], 1 }
  0xb3   :  { %378 = vsyncpa [#allocation9], 1 }
  0xb4   :  { %380 = vsyncpa [#allocation9 + $0x1], 1 }

</bundles_post_ra>
